<compile_context>
chip_gen: v7x
topology: tpu7x:2x2x1
jax: 0.10.0
libtpu: 0.0.40
codegen_flags: <defaults>
</compile_context>

<pallas_src>
import functools

import jax
import jax.numpy as jnp
from jax import lax
from jax.experimental import pallas as pl
from jax.experimental.pallas import tpu as pltpu


def _mam_kernel(x_ref, wstack_ref, bstack_ref, wa1k_ref, wa2_ref, coeff_ref,
                o_ref, *, hw_valid, c, cr):
    tb, _, hwp = x_ref.shape

    # Resident weights: loaded once per grid step, outside the image loop.
    w_stack = wstack_ref[...]          # (2C+Cr, C)  == [Wk; Wv; Wa1x], MXU dtype
    b_stack = bstack_ref[...]          # (2C+Cr, 1)  f32 == [bk; bv; ba1]
    wa1k = wa1k_ref[...]               # (Cr, C)     attention conv1, k1 half
    wa2 = wa2_ref[...]                 # (C, Cr)     attention conv2, f^2-mean folded
    c1 = coeff_ref[0]
    c2 = coeff_ref[1]
    op_dtype = w_stack.dtype

    if hwp > hw_valid:                 # static: only emitted when lanes are padded
        lane = lax.broadcasted_iota(jnp.int32, (1, hwp), 1)
        lane_valid = lane < hw_valid   # (1, hwp) row mask; broadcast in jnp.where
    else:
        lane_valid = None

    def body(i, carry):
        xf = x_ref[i]                                                # (C, HWp)

        # Fused key / value / attention-conv1(x-half): one MXU push for 3 convs.
        y = jnp.dot(w_stack, xf, preferred_element_type=jnp.float32) + b_stack
        k1 = jnp.maximum(y[:c], 0.0)                                 # (C,  HWp) f32
        v = y[c:2 * c]                                               # (C,  HWp) f32

        # attention conv1 on concat([k1, x]): k1-half matmul + x-half already in y.
        h = jnp.dot(wa1k, k1.astype(op_dtype),
                    preferred_element_type=jnp.float32) + y[2 * c:]
        h = jnp.maximum(h, 0.0)                                      # (Cr, HWp)

        att = jnp.dot(wa2, h.astype(op_dtype),
                      preferred_element_type=jnp.float32)            # (C,  HWp)

        # Spatial softmax with f32 statistics; padded lanes masked out.
        if lane_valid is not None:
            att = jnp.where(lane_valid, att, -1e30)
        m = jnp.max(att, axis=-1, keepdims=True)
        e = jnp.exp(att - m)
        s = jnp.sum(e, axis=-1, keepdims=True)
        scale = c2 * pl.reciprocal(s, approx=False)                  # (C, 1) vector

        out = c1 * xf.astype(jnp.float32) + (e * v) * scale
        o_ref[i] = out.astype(o_ref.dtype)
        return carry

    # fori_loop (not a Python unroll) bounds live ranges to one image's temporaries.
    lax.fori_loop(0, tb, body, None, unroll=2 if tb >= 2 else 1)


def _tpu_budget():
    """Generation-aware budgets (v5e/v6e: 128 MiB VMEM, 1 TC; v7x: 64 MiB, 2 TCs)."""
    vmem_phys = 64 * 1024 * 1024        # conservative default (v7x per-TC VMEM)
    num_tc = 2                          # conservative: keep >=2 grid steps if unknown
    try:
        info = pltpu.get_tpu_info()
        vmem_phys = int(getattr(info, "vmem_capacity_bytes", vmem_phys))
        cores = int(getattr(info, "num_cores", 0) or 0)
        num_tc = cores if cores >= 1 else (2 if vmem_phys <= 64 * 1024 * 1024 else 1)
    except Exception:
        pass
    vmem_limit = min(int(vmem_phys * 0.75), 100 * 1024 * 1024)
    act_budget = vmem_limit // 2
    return vmem_limit, act_budget, (2 if num_tc >= 2 else 1)


def _choose_tb(batch, c, cr, hwp, itemsize, act_budget_bytes, num_tc):
    """Images per block: as large as the budget allows; >=2 grid steps only on 2-TC chips."""
    per_image = 4 * itemsize * c * hwp              # double-buffered input+output blocks
    temps = 4 * hwp * (2 * c + cr + 5 * c)          # ONE live set of f32 temps (fori_loop)
    weights = 4 * (2 * (2 * c + cr) * c + 2 * c * cr + 2 * c + cr)
    budget = max(act_budget_bytes - temps - weights, per_image)
    tb = max(1, min(batch, budget // per_image))
    if num_tc >= 2 and batch >= 2:
        tb = max(1, min(tb, (batch + 1) // 2))      # keep both TensorCores busy
    return int(tb)


def _fold_bn(w, bn_stats, eps=1e-5):
    """Fold eval-mode BatchNorm2d into a bias-free 1x1 conv weight."""
    gamma, beta, mean, var = bn_stats
    scale = gamma / jnp.sqrt(var + eps)
    return w * scale[:, None], beta - mean * scale


def mam_forward(x, params, *, eps=1e-5):
    """x: [B, C, H, W]. params: PyTorch-style MAM parameters (eval-mode BN)."""
    b, c, h, w = x.shape
    hw = h * w
    hwp = ((hw + 127) // 128) * 128                 # lane-dense spatial axis
    cr = params["w_att1"].shape[0]
    factor2 = params["w_att2"].shape[0] // c

    # ---- wrapper-side algebra / layout (exact, free at kernel time) ----
    wk, bk = _fold_bn(params["w_key"], params["bn_key"], eps)
    wv, bv = _fold_bn(params["w_val"], params["bn_val"], eps)
    wa1, ba1 = _fold_bn(params["w_att1"], params["bn_att1"], eps)
    wa1k, wa1x = wa1[:, :c], wa1[:, c:]             # split over concat([k1, x])
    wa2 = params["w_att2"].reshape(c, factor2, cr).mean(axis=1)     # fold mean(2)

    # MXU operands in the activation dtype (bf16 in => bf16 matmuls); stats stay f32.
    mxu_dtype = jnp.bfloat16 if x.dtype == jnp.bfloat16 else jnp.float32
    w_stack = jnp.concatenate([wk, wv, wa1x], axis=0).astype(mxu_dtype)   # (2C+Cr, C)
    b_stack = jnp.concatenate([bk, bv, ba1], axis=0).reshape(-1, 1).astype(jnp.float32)
    wa1k = wa1k.astype(mxu_dtype)
    wa2 = wa2.astype(mxu_dtype)
    coeffs = jnp.stack([params["coeff1"], params["coeff2"]]).astype(jnp.float32)

    x_flat = x.reshape(b, c, hw)
    if hwp != hw:
        x_flat = jnp.pad(x_flat, ((0, 0), (0, 0), (0, hwp - hw)))

    vmem_limit, act_budget, num_tc = _tpu_budget()
    tb = _choose_tb(b, c, cr, hwp, x.dtype.itemsize, act_budget, num_tc)

    # Pad the batch instead of shrinking tb for awkward batch sizes; keep the grid
    # even on 2-TC chips so no core idles on the last step.
    grid_n = -(-b // tb)
    if num_tc >= 2 and grid_n > 1 and grid_n % 2 == 1:
        grid_n += 1
    b_pad = grid_n * tb
    if b_pad != b:
        x_flat = jnp.pad(x_flat, ((0, b_pad - b), (0, 0), (0, 0)))

    def _resident(arr):
        return pl.BlockSpec(arr.shape, lambda i: (0,) * arr.ndim)   # resident, no re-DMA

    out_flat = pl.pallas_call(
        functools.partial(_mam_kernel, hw_valid=hw, c=c, cr=cr),
        out_shape=jax.ShapeDtypeStruct((b_pad, c, hwp), x.dtype),
        grid_spec=pltpu.PrefetchScalarGridSpec(
            num_scalar_prefetch=0,
            grid=(grid_n,),
            in_specs=[
                pl.BlockSpec((tb, c, hwp), lambda i: (i, 0, 0)),
                _resident(w_stack), _resident(b_stack),
                _resident(wa1k), _resident(wa2),
                pl.BlockSpec(memory_space=pltpu.MemorySpace.SMEM),   # coeffs
            ],
            out_specs=pl.BlockSpec((tb, c, hwp), lambda i: (i, 0, 0)),
        ),
        compiler_params=pltpu.CompilerParams(
            dimension_semantics=("parallel",),
            vmem_limit_bytes=vmem_limit,
        ),
    )(x_flat, w_stack, b_stack, wa1k, wa2, coeffs)

    return out_flat[:b, :, :hw].reshape(b, c, h, w)


def mam_reference(x, params, eps=1e-5):
    """Pure-JAX reference mirroring the PyTorch module (eval-mode BN)."""
    b, c, h, w = x.shape

    def bn(y, stats):
        gamma, beta, mean, var = stats
        inv = gamma / jnp.sqrt(var + eps)
        return ((y - mean[None, :, None, None]) * inv[None, :, None, None]
                + beta[None, :, None, None])

    def conv1x1(y, wmat):
        return jnp.einsum("oi,bihw->bohw", wmat, y)

    k1 = jax.nn.relu(bn(conv1x1(x, params["w_key"]), params["bn_key"]))
    v = bn(conv1x1(x, params["w_val"]), params["bn_val"]).reshape(b, c, h * w)
    y = jnp.concatenate([k1, x], axis=1)
    att = jax.nn.relu(bn(conv1x1(y, params["w_att1"]), params["bn_att1"]))
    att = conv1x1(att, params["w_att2"])                      # (B, f*f*C, H, W)
    f2 = params["w_att2"].shape[0] // c
    att = att.reshape(b, c, f2, h, w).mean(axis=2).reshape(b, c, h * w)
    k2 = (jax.nn.softmax(att, axis=-1) * v).reshape(b, c, h, w)
    return params["coeff1"] * x + params["coeff2"] * k2


if __name__ == "__main__":
    # Small shapes consistent with the module: dim must be divisible by 4.
    B, C, H, W = 2, 8, 16, 16
    f = 2
    Cr = C // 4

    key = jax.random.PRNGKey(0)
    keys = jax.random.split(key, 9)

    def normal(k, shape, scale=0.1):
        return scale * jax.random.normal(k, shape, dtype=jnp.float32)

    def bn_params(k, n):
        ka, kb, kc, kd = jax.random.split(k, 4)
        gamma = 1.0 + normal(ka, (n,))
        beta = normal(kb, (n,))
        mean = normal(kc, (n,))
        var = jax.random.uniform(kd, (n,), minval=0.5, maxval=1.5,
                                 dtype=jnp.float32)
        return (gamma, beta, mean, var)

    x = jax.random.normal(keys[0], (B, C, H, W), dtype=jnp.float32)
    params = dict(
        w_key=normal(keys[1], (C, C), 0.2),
        bn_key=bn_params(keys[2], C),
        w_val=normal(keys[3], (C, C), 0.2),
        bn_val=bn_params(keys[4], C),
        w_att1=normal(keys[5], (Cr, 2 * C), 0.2),
        bn_att1=bn_params(keys[6], Cr),
        w_att2=normal(keys[7], (f * f * C, Cr), 0.2),
        coeff1=jnp.float32(1.25),
        coeff2=jnp.float32(0.75),
    )

    # f32 path, lane-aligned spatial axis (hw == hwp).
    out = mam_forward(x, params)
    jax.block_until_ready(out)
    ref = mam_reference(x, params)
    assert out.shape == (B, C, H, W)
    err = float(jnp.max(jnp.abs(out - ref)))
    assert jnp.allclose(out, ref, atol=1e-4, rtol=1e-4), err

    # f32 path with lane padding (hw=100 -> hwp=128) exercising the softmax mask.
    x_pad = jax.random.normal(keys[8], (B, C, 10, 10), dtype=jnp.float32)
    out_pad = mam_forward(x_pad, params)
    jax.block_until_ready(out_pad)
    ref_pad = mam_reference(x_pad, params)
    err_pad = float(jnp.max(jnp.abs(out_pad - ref_pad)))
    assert jnp.allclose(out_pad, ref_pad, atol=1e-4, rtol=1e-4), err_pad

    # bf16 I/O path (halves HBM traffic; bf16 MXU operands, f32 softmax stats).
    out_bf16 = mam_forward(x.astype(jnp.bfloat16), params)
    jax.block_until_ready(out_bf16)
    err_bf16 = float(jnp.max(jnp.abs(out_bf16.astype(jnp.float32) - ref)))
    assert jnp.allclose(out_bf16.astype(jnp.float32), ref,
                        atol=1e-1, rtol=1e-1), err_bf16

    print("KERNEL_OK")
</pallas_src>

<mosaic_0001>
module attributes {stable_mosaic.version = 11 : i64} {
  func.func @_mam_kernel(%arg0: i32, %arg1: memref<1x8x256xf32, #tpu.memory_space<vmem>>, %arg2: memref<18x8xf32, #tpu.memory_space<vmem>>, %arg3: memref<18x1xf32, #tpu.memory_space<vmem>>, %arg4: memref<2x8xf32, #tpu.memory_space<vmem>>, %arg5: memref<8x2xf32, #tpu.memory_space<vmem>>, %arg6: memref<2xf32, #tpu.memory_space<smem>>, %arg7: memref<1x8x256xf32, #tpu.memory_space<vmem>>) attributes {dimension_semantics = [#tpu.dimension_semantics<parallel>], iteration_bounds = array<i64: 2>, scalar_prefetch = 0 : i64, scratch_operands = 0 : i64, tpu.core_type = #tpu.core_type<tc>, window_params = [{transform_indices = @transform_0, window_bounds = array<i64: 1, 8, 256>}, {pipeline_mode = #tpu.pipeline_mode<synchronous>, transform_indices = @transform_1, window_bounds = array<i64: 18, 8>}, {pipeline_mode = #tpu.pipeline_mode<synchronous>, transform_indices = @transform_2, window_bounds = array<i64: 18, 1>}, {pipeline_mode = #tpu.pipeline_mode<synchronous>, transform_indices = @transform_3, window_bounds = array<i64: 2, 8>}, {pipeline_mode = #tpu.pipeline_mode<synchronous>, transform_indices = @transform_4, window_bounds = array<i64: 8, 2>}, {transform_indices = @transform_5, window_bounds = array<i64: 2>}, {transform_indices = @transform_6, window_bounds = array<i64: 1, 8, 256>}]} {
    %c0 = arith.constant 0 : index
    %c0_0 = arith.constant 0 : index
    %0 = vector.load %arg2[%c0, %c0_0] : memref<18x8xf32, #tpu.memory_space<vmem>>, vector<18x8xf32>
    %c0_1 = arith.constant 0 : index
    %c0_2 = arith.constant 0 : index
    %1 = vector.load %arg3[%c0_1, %c0_2] : memref<18x1xf32, #tpu.memory_space<vmem>>, vector<18x1xf32>
    %c0_3 = arith.constant 0 : index
    %c0_4 = arith.constant 0 : index
    %2 = vector.load %arg4[%c0_3, %c0_4] : memref<2x8xf32, #tpu.memory_space<vmem>>, vector<2x8xf32>
    %c0_5 = arith.constant 0 : index
    %c0_6 = arith.constant 0 : index
    %3 = vector.load %arg5[%c0_5, %c0_6] : memref<8x2xf32, #tpu.memory_space<vmem>>, vector<8x2xf32>
    %c0_7 = arith.constant 0 : index
    %4 = memref.load %arg6[%c0_7] : memref<2xf32, #tpu.memory_space<smem>>
    %c1 = arith.constant 1 : index
    %5 = memref.load %arg6[%c1] : memref<2xf32, #tpu.memory_space<smem>>
    %c0_i32 = arith.constant 0 : i32
    %6 = arith.index_cast %c0_i32 : i32 to index
    %c0_8 = arith.constant 0 : index
    %c0_9 = arith.constant 0 : index
    %7 = vector.load %arg1[%6, %c0_8, %c0_9] : memref<1x8x256xf32, #tpu.memory_space<vmem>>, vector<1x8x256xf32>
    %8 = vector.shape_cast %7 : vector<1x8x256xf32> to vector<8x256xf32>
    %cst = arith.constant dense<0.000000e+00> : vector<18x256xf32>
    %9 = tpu.matmul %0, %8, %cst {dimension_numbers = #tpu.dot_dimension_numbers<[1], [0], [0], [1], [0, 0, 1, 1], [], []>} : vector<18x8xf32>, vector<8x256xf32>, vector<18x256xf32> -> vector<18x256xf32>
    %10 = vector.broadcast %1 : vector<18x1xf32> to vector<18x256xf32>
    %11 = arith.addf %9, %10 : vector<18x256xf32>
    %12 = vector.extract_strided_slice %11 {offsets = [0, 0], sizes = [8, 256], strides = [1, 1]} : vector<18x256xf32> to vector<8x256xf32>
    %cst_10 = arith.constant 0.000000e+00 : f32
    %13 = vector.broadcast %cst_10 : f32 to vector<8x256xf32>
    %14 = arith.maximumf %12, %13 : vector<8x256xf32>
    %15 = vector.extract_strided_slice %11 {offsets = [8, 0], sizes = [8, 256], strides = [1, 1]} : vector<18x256xf32> to vector<8x256xf32>
    %cst_11 = arith.constant dense<0.000000e+00> : vector<2x256xf32>
    %16 = tpu.matmul %2, %14, %cst_11 {dimension_numbers = #tpu.dot_dimension_numbers<[1], [0], [0], [1], [0, 0, 1, 1], [], []>} : vector<2x8xf32>, vector<8x256xf32>, vector<2x256xf32> -> vector<2x256xf32>
    %17 = vector.extract_strided_slice %11 {offsets = [16, 0], sizes = [2, 256], strides = [1, 1]} : vector<18x256xf32> to vector<2x256xf32>
    %18 = arith.addf %16, %17 : vector<2x256xf32>
    %cst_12 = arith.constant 0.000000e+00 : f32
    %19 = vector.broadcast %cst_12 : f32 to vector<2x256xf32>
    %20 = arith.maximumf %18, %19 : vector<2x256xf32>
    %cst_13 = arith.constant dense<0.000000e+00> : vector<8x256xf32>
    %21 = tpu.matmul %3, %20, %cst_13 {dimension_numbers = #tpu.dot_dimension_numbers<[1], [0], [0], [1], [0, 0, 1, 1], [], []>} : vector<8x2xf32>, vector<2x256xf32>, vector<8x256xf32> -> vector<8x256xf32>
    %cst_14 = arith.constant dense<0xFF800000> : vector<8xf32>
    %22 = vector.multi_reduction <maximumf>, %21, %cst_14 [1] : vector<8x256xf32> to vector<8xf32>
    %23 = vector.shape_cast %22 : vector<8xf32> to vector<8x1xf32>
    %24 = vector.broadcast %23 : vector<8x1xf32> to vector<8x256xf32>
    %25 = arith.subf %21, %24 : vector<8x256xf32>
    %26 = math.exp %25 : vector<8x256xf32>
    %cst_15 = arith.constant dense<0.000000e+00> : vector<8xf32>
    %27 = vector.multi_reduction <add>, %26, %cst_15 [1] : vector<8x256xf32> to vector<8xf32>
    %28 = vector.shape_cast %27 : vector<8xf32> to vector<8x1xf32>
    %29 = tpu.reciprocal %28 : vector<8x1xf32> -> vector<8x1xf32>
    %30 = vector.broadcast %5 : f32 to vector<8x1xf32>
    %31 = arith.mulf %30, %29 : vector<8x1xf32>
    %32 = vector.broadcast %4 : f32 to vector<8x256xf32>
    %33 = arith.mulf %32, %8 : vector<8x256xf32>
    %34 = arith.mulf %26, %15 : vector<8x256xf32>
    %35 = vector.broadcast %31 : vector<8x1xf32> to vector<8x256xf32>
    %36 = arith.mulf %34, %35 : vector<8x256xf32>
    %37 = arith.addf %33, %36 : vector<8x256xf32>
    %38 = arith.index_cast %c0_i32 : i32 to index
    %c0_16 = arith.constant 0 : index
    %c0_17 = arith.constant 0 : index
    %39 = vector.load %arg7[%38, %c0_16, %c0_17] : memref<1x8x256xf32, #tpu.memory_space<vmem>>, vector<1x8x256xf32>
    %40 = vector.shape_cast %39 : vector<1x8x256xf32> to vector<8x256xf32>
    %41 = vector.shape_cast %37 : vector<8x256xf32> to vector<1x8x256xf32>
    tpu.vector_store %arg7[%38, %c0_16, %c0_17], %41 {strides = array<i32>} : memref<1x8x256xf32, #tpu.memory_space<vmem>>, vector<1x8x256xf32>,
    %c1_i32 = arith.constant 1 : i32
    return
  }
  func.func @transform_0(%arg0: i32) -> (i32, i32, i32) {
    %c0_i32 = arith.constant 0 : i32
    %c0_i32_0 = arith.constant 0 : i32
    %c0_i32_1 = arith.constant 0 : i32
    return %arg0, %c0_i32, %c0_i32_0 : i32, i32, i32
  }
  func.func @transform_1(%arg0: i32) -> (i32, i32) {
    %c0_i32 = arith.constant 0 : i32
    %c0_i32_0 = arith.constant 0 : i32
    %c0_i32_1 = arith.constant 0 : i32
    return %c0_i32, %c0_i32_0 : i32, i32
  }
  func.func @transform_2(%arg0: i32) -> (i32, i32) {
    %c0_i32 = arith.constant 0 : i32
    %c0_i32_0 = arith.constant 0 : i32
    %c0_i32_1 = arith.constant 0 : i32
    return %c0_i32, %c0_i32_0 : i32, i32
  }
  func.func @transform_3(%arg0: i32) -> (i32, i32) {
    %c0_i32 = arith.constant 0 : i32
    %c0_i32_0 = arith.constant 0 : i32
    %c0_i32_1 = arith.constant 0 : i32
    return %c0_i32, %c0_i32_0 : i32, i32
  }
  func.func @transform_4(%arg0: i32) -> (i32, i32) {
    %c0_i32 = arith.constant 0 : i32
    %c0_i32_0 = arith.constant 0 : i32
    %c0_i32_1 = arith.constant 0 : i32
    return %c0_i32, %c0_i32_0 : i32, i32
  }
  func.func @transform_5(%arg0: i32) -> i32 {
    %c0_i32 = arith.constant 0 : i32
    %c0_i32_0 = arith.constant 0 : i32
    return %c0_i32 : i32
  }
  func.func @transform_6(%arg0: i32) -> (i32, i32, i32) {
    %c0_i32 = arith.constant 0 : i32
    %c0_i32_0 = arith.constant 0 : i32
    %c0_i32_1 = arith.constant 0 : i32
    return %arg0, %c0_i32, %c0_i32_0 : i32, i32, i32
  }
}

</mosaic_0001>

<bundles_post_ra>
// kernel: tpu_custom_call.1
= control target key start
LH: loop header
LB: loop body
LE: loop exit
PB: predicated region body
PF: predicated region fallthrough
CT: control target
= control target key end

     0   :  { %11 = vsyncpa [#allocation4], 0  ;;  %s1023_s0 = inlined_call_operand.vmem [shape: f32[2,8,256], index: 0, kind: input, shape index: {}]   ;;  %s1024_s1 = inlined_call_operand.vmem [shape: f32[18,8], index: 1, kind: input, shape index: {}]   ;;  %s1025_s2 = inlined_call_operand.vmem [shape: f32[18,1], index: 2, kind: input, shape index: {}]   ;;  %s1026_s3 = inlined_call_operand.vmem [shape: f32[2,8], index: 3, kind: input, shape index: {}]   ;;  %s1027_s4 = inlined_call_operand.vmem [shape: f32[8,2], index: 4, kind: input, shape index: {}]   ;;  %s1028_s5 = inlined_call_operand.vmem [shape: f32[2], index: 5, kind: input, shape index: {}]   ;;  %s1029_s6 = inlined_call_operand.hbm [shape: f32[2,8,256], index: 6, kind: output, shape index: {}]  }
   0x1   :  { %12 = vsyncpa [#allocation3], 0 }
   0x2   :  { %14 = vsyncpa [#allocation3 + $0x1], 0  ;;  %s867_s21 = smov 0   ;;  %s869_s22 = smov 0  }
   0x3   :  { %s871_s23 = smov 0   ;;  %s873_s24 = smov 0  }
   0x4 LB: > { %s888_s25 = sadd.s32 4294967295, %s826_s24   ;;  %s656_s26 = sadd.s32 4294967294, %s826_s24   ;;  %s826_s24 = sphi %s873_s24, %s1036_s24   ;;  %s822_s23 = sphi %s871_s23, %s1035_s23   ;;  %s818_s22 = sphi %s869_s22, %s1034_s22   ;;  %s814_s21 = sphi %s867_s21, %s1033_s21  }
   0x5   : > { %s892_s27 = sadd.s32 1, %s826_s24   ;;  %s158_s28 = sadd.s32 1, %s822_s23 }
   0x6   : > { %s155_s29 = ssub.s32 %s826_s24, %s892_s27  ;;  %p168_p0 = scmp.ne.s32.totalorder %s822_s23, %s818_s22 }
   0x7   : > { %p156_p1 = scmp.eq.s32.totalorder %s155_s29, 0  ;;  %p169_p2 = scmp.eq.s32.totalorder %s888_s25, 1 }
   0x8   : > { %p174_p3 = scmp.ne.s32.totalorder %s818_s22, %s814_s21  ;;  %p175_p4 = scmp.eq.s32.totalorder %s656_s26, 1 }
   0x9   : > { %s903_s30 = scalar_select %p156_p1, %s822_s23, %s158_s28  }
   0xa   : > { %p905_p5 = por %p169_p2, %p168_p0  ;;  %p909_p6 = por %p175_p4, %p174_p3 }
   0xb   : > { %p657_p7 = scmp.ge.s32.totalorder %s826_s24, 1  ;;  %p182_p8 = scmp.lt.s32.totalorder %s826_s24, 3 }
   0xc   : > { %p700_p9 = scmp.eq.s32.totalorder %s888_s25, 0  ;;  %s207_s12 = sshll.u32 %s1028_s5, 4  ;;  %s208_s12 = int_to_ptr.vmem [resolvable:$true] %s207_s12 }
   0xd   : > { %p916_p10 = pnand %p657_p7, %p182_p8  ;;  %s745_s13 = scalar_lea.vmem %s208_s12, 16 }
   0xe   : > { %p746_p13 = scmp.ne.s32.totalorder %s208_s12, %s745_s13  ;;  %p753_p3 = scmp.lt.s32.totalorder %s208_s12, %s208_s12 }
   0xf   : > { %p692_p11 = pneg %p916_p10  ;;  %p754_p4 = scmp.lt.s32.totalorder %s745_s13, %s745_s13 }
  0x11   : > { %p693_p12 = pnand %p700_p9, %p692_p11  ;;  %p755_p7 = por %p754_p4, %p753_p3 }
  0x13   : > { %p747_p0 = pneg %p693_p12 }
  0x15   : > { %p748_p1 = pnand %p747_p0, %p746_p13 }
  0x17   : > { %p749_p2 = pneg %p748_p1 }
  0x19   : > { %p756_p8 = pnand %p755_p7, %p749_p2 }
  0x1b   : > { %759 = shalt.err (!%p756_p8)
}
  0x1c   : > { %s828_s14 = smov [#allocation2]   ;;  %228 = sbr.rel (%p916_p10) target bundleno = 1033 (0x409), region = 44 }
  0x1d   : > { %695 = dma.vmem_to_smem (!%p693_p12), %s208_s12, 16, %s828_s14, [#allocation4]  }
  0x23   : > { %805 = dma.done.wait (%p700_p9), [#allocation4], 16  }
  0x24   : > { %807 = vsyncadd (%p700_p9), [#allocation4], 4294967280 }
  0x25   : > { %234 = sfence }
  0x26   : > { %p259_p11 = scmp.lt.s32.totalorder %s888_s25, 1  ;;  %v829_v0 = vmov 0.0   ;;  %v267_v1 = vld [vmem:[%s1025_s2] sm:$0xff]  ;;  %v830_v2 = vmov 0   ;;  %vm291_vm0 = vcmask 64512   ;;  %v265_v6 = vld [vmem:[%s1024_s1 + $0x8] sm:$0xff] }
  0x27   : > { %365 = vmatprep.mubr.f32.mxu0 %v829_v0  ;;  %371 = vmatprep.mubr.f32.mxu1 %v829_v0  ;;  %v264_v3 = vld [vmem:[%s1024_s1] sm:$0xff]  ;;  %v269_v7 = vld [vmem:[%s1025_s2 + $0x10] sm:$0x3]  ;;  %v268_v9 = vld [vmem:[%s1025_s2 + $0x8] sm:$0xff]  ;;  %vm466_vm1 = vcmask 1041408   ;;  %vm462_vm2 = vcmask 15360  }
  0x28   : > { %s260_s17 = scalar_select %p259_p11, %s888_s25, 1  ;;  %738 = vset.pattern.permute.xlu0 %v830_v2  ;;  %v266_v8 = vld [vmem:[%s1024_s1 + $0x10] sm:$0x3]  ;;  %v270_v21 = vld [vmem:[%s1026_s3] sm:$0x3] }
  0x29   : > { %278 = vperm.xlu0 %738, %v267_v1   ;;  %v271_v31 = vld [vmem:[%s1027_s4] sm:$0xff]  ;;  %s665_s28 = sld [smem:[#allocation2 + $0x1]]  ;;  %s256_s29 = sand.u32 1, %s818_s22  }
  0x2a   : > { %s678_s18 = sshll.u32 %s260_s17, 4  ;;  %s662_s9 = sshll.u32 %s256_s29, 4 }
  0x2b   : > { %s263_s26 = scalar_lea.vmem %s1023_s0, %s678_s18  ;;  %s679_s10 = sshll.u32 %s888_s25, 8 }
  0x2c   : > { %v944_v4 = vld [vmem:[%s263_s26 + $0x8] sm:$0xff]  ;;  %v946_v5 = vld [vmem:[%s263_s26] sm:$0xff]  ;;  %s272_s26 = sld [smem:[#allocation2]]  ;;  %s258_s11 = scalar_lea.vmem [#allocation5], %s662_s9 }
  0x2d   : > { %301 = vmatprep.subr.mxu0 %v944_v4  ;;  %680 = vmatprep.subr.mxu1 %v944_v4  ;;  %s585_s12 = sshll.u32 %s258_s11, 4  ;;  %s981_s15 = scalar_lea.hbm %s1029_s6, %s679_s10  ;;  %s983_s12 = int_to_ptr.vmem [resolvable:$true] %s585_s12 }
  0x2e   : > { %302 = vmatpush1.msra.mxu0 %v946_v5  ;;  %681 = vmatpush1.msra.mxu1 %v946_v5  ;;  %s571_s16 = scalar_lea.sflag [#allocation3], %s256_s29  ;;  %s760_s25 = scalar_lea.vmem %s983_s12, 256 }
  0x2f   : > { %666 = vmatmul.mubr.msk.f32.vlgmr.msra.gmra.mrb[0].mxu0 %vm291_vm0, %v264_v3  ;;  %667 = vmatmul.mubr.msk.f32.vlgmr.msra.gmra.mrb[0].mxu1 %vm291_vm0, %v265_v6  ;;  %v557_v50 = vstv %s665_s28  ;;  %p761_p9 = scmp.ne.s32.totalorder %s983_s12, %s760_s25  ;;  %s831_s17 = smov [#allocation5]  }
  0x30   : > { %377 = vmatprep.mubr.f32.mxu1 %v829_v0  ;;  %288 = vperm.xlu0 %738, %v269_v7   ;;  %s764_s18 = sshll.u32 %s831_s17, 4  ;;  %s765_s18 = int_to_ptr.vmem [resolvable:$false] %s764_s18 }
  0x31   : > { %453 = vmatprep.mubr.f32.mxu0 %v829_v0  ;;  %p762_p10 = pnand %p761_p9, %p905_p5  ;;  %s766_s19 = scalar_lea.vmem %s765_s18, 512 }
  0x32   : > { %v559_v49 = vstv %s272_s26  ;;  %p767_p13 = scmp.lt.s32.totalorder %s983_s12, %s765_s18  ;;  %p768_p0 = scmp.lt.s32.totalorder %s766_s19, %s760_s25 }
  0x33   : > { %668 = vmatmul.mubr.msk.f32.gmra.mrb[2].mxu1 %vm291_vm0, %v266_v8  ;;  %v561_v52 = vmul.f32 %v559_v49, %v944_v4  ;;  %v560_v53 = vmul.f32 %v559_v49, %v946_v5  ;;  %p763_p12 = pneg %p762_p10 }
  0x34   : > { %283 = vperm.xlu0 %738, %v268_v9   ;;  %537 = vmatprep.mubr.f32.mxu1 %v829_v0  ;;  %p769_p1 = por %p768_p0, %p767_p13 }
  0x36   : > { %p770_p2 = pnand %p769_p1, %p763_p12 }
  0xa8   : > { %v279_v10 = vpop.permute.xlu0 %278 }
  0xaf   : > { %v289_v22 = vpop.permute.xlu0 %288 }
  0xb3   : > { %v284_v40 = vpop.permute.xlu0 %283 }
 0x102   : > { %v367_v11 = vpop.f32.mrb[0].mxu0  ;;  %v373_v12 = vpop.f32.mrb[0].mxu1 }
 0x103   : > { %v368_v13 = vadd.f32 %v367_v11, %v279_v10  ;;  %v369_v14 = vpop.f32.mrb[1].mxu0  ;;  %v375_v15 = vpop.f32.mrb[1].mxu1  ;;  %v374_v41 = vadd.f32 %v373_v12, %v284_v40 }
 0x104   : > { %v370_v16 = vadd.f32 %v369_v14, %v279_v10  ;;  %v376_v43 = vadd.f32 %v375_v15, %v284_v40 }
 0x105   : > { %v384_v19 = vmax.f32 %v368_v13, 0.0 }
 0x106   : > { %v385_v17 = vmax.f32 %v370_v16, 0.0  ;;  %v379_v18 = vpop.f32.mrb[2].mxu1 }
 0x107   : > { %v381_v20 = vpop.f32.mrb[3].mxu1  ;;  %v380_v23 = vadd.f32 %v379_v18, %v289_v22 }
 0x108   : > { %389 = vmatprep.subr.mxu0 %v385_v17  ;;  %v382_v24 = vadd.f32 %v381_v20, %v289_v22 }
 0x109   : > { %390 = vmatpush1.msra.mxu0 %v384_v19 }
 0x10a   : > { %669 = vmatmul.mubr.msk.f32.vlgmr.msra.gmra.mrb[2].mxu0 %vm291_vm0, %v270_v21 }
 0x1dd   : > { %v455_v25 = vpop.f32.mrb[2].mxu0 }
 0x1de   : > { %v456_v26 = vadd.f32 %v455_v25, %v380_v23  ;;  %v457_v27 = vpop.f32.mrb[3].mxu0 }
 0x1df   : > { %v458_v28 = vadd.f32 %v457_v27, %v382_v24 }
 0x1e0   : > { %v460_v30 = vmax.f32 %v456_v26, 0.0 }
 0x1e1   : > { %v461_v29 = vmax.f32 %v458_v28, 0.0 }
 0x1e3   : > { %670 = vmatprep.subr.msk.mxu1 %vm466_vm1, %v461_v29 }
 0x1e4   : > { %671 = vmatpush1.msk.msra.mxu1 %vm466_vm1, %v460_v30 }
 0x1e5   : > { %672 = vmatmul.mubr.msk.f32.vlgmr.msra.gmra.mrb[4].mxu1 %vm462_vm2, %v271_v31 }
 0x2b8   : > { %v539_v32 = vpop.f32.mrb[4].mxu1 }
 0x2b9   : > { %v541_v33 = vpop.f32.mrb[5].mxu1 }
 0x2ba   : > { %v544_v34 = vmax.f32 %v539_v32, %v541_v33 }
 0x2bc   : > { %545 = vmax.xlane.f32.xlu1 %v544_v34 }
 0x349   : > { %v546_v35 = vpop.xlane.xlu1 %545 }
 0x34a   : > { %v547_v36 = vsub.f32 %v539_v32, %v546_v35  ;;  %v548_v37 = vsub.f32 %v541_v33, %v546_v35 }
 0x34c   : > { %v549_v38 = vmul.f32 1.442695, %v547_v36  ;;  %v551_v39 = vmul.f32 1.442695, %v548_v37 }
 0x34e   : > { %739 = vpow2.f32 %v549_v38 }
 0x34f   : > { %741 = vpow2.f32 %v551_v39 }
 0x358   : > { %v740_v42 = vpop.eup %739 }
 0x359   : > { %v742_v44 = vpop.eup %741  ;;  %v562_v45 = vmul.f32 %v740_v42, %v374_v41 }
 0x35a   : > { %v553_v46 = vadd.f32 %v742_v44, %v740_v42  ;;  %v563_v47 = vmul.f32 %v742_v44, %v376_v43 }
 0x35c   : > { %554 = vadd.xlane.f32.xlu1 %v553_v46 }
 0x3e9   : > { %v555_v48 = vpop.xlane.xlu1 %554 }
 0x3ea   : > { %743 = vrcp.f32 %v555_v48 }
 0x3f4   : > { %v744_v51 = vpop.eup %743 }
 0x3f5   : > { %v558_v54 = vmul.f32 %v744_v51, %v557_v50 }
 0x3f7   : > { %v564_v55 = vmul.f32 %v562_v45, %v558_v54  ;;  %v565_v56 = vmul.f32 %v563_v47, %v558_v54 }
 0x3f9   : > { %v566_v57 = vadd.f32 %v564_v55, %v560_v53  ;;  %v567_v58 = vadd.f32 %v565_v56, %v561_v52 }
 0x3fb   : > { %568 = vst [vmem:[%s258_s11] sm:$0xff] %v566_v57  ;;  %569 = vst [vmem:[%s258_s11 + $0x8] sm:$0xff] %v567_v58 }
 0x3fc   : > { %773 = shalt.err (!%p770_p2)
}
 0x3fd   : > { %s774_s20 = scalar_lea.hbm %s981_s15, 256  ;;  %s778_s29 = scalar_lea.hbm %s1029_s6, 512 }
 0x3fe   : > { %p775_p3 = scmp.ne.s32.totalorder %s981_s15, %s774_s20  ;;  %p779_p8 = scmp.lt.u32.totalorder %s981_s15, %s1029_s6 }
 0x3ff   : > { %p780_p11 = scmp.lt.u32.totalorder %s778_s29, %s774_s20  ;;  %p782_p10 = scmp.lt.u32.totalorder %s774_s20, %s981_s15 }
 0x400   : > { %p776_p4 = pnand %p775_p3, %p905_p5 }
 0x401   : > { %p781_p9 = por %p780_p11, %p779_p8 }
 0x402   : > { %p777_p7 = pneg %p776_p4 }
 0x403   : > { %p783_p12 = por %p782_p10, %p781_p9 }
 0x405   : > { %p784_p13 = pnand %p783_p12, %p777_p7 }
 0x407   : > { %787 = shalt.err (!%p784_p13)
}
 0x408   : > { %690 = dma.vmem_to_hbm [thread:$0]  (%p905_p5), %s983_s12, 256, %s981_s15, %s571_s16  }
 0x409 PF: > { %p702_p0 = scmp.ge.s32.totalorder %s826_s24, 2  ;;  %s597_s11 = sand.u32 1, %s814_s21  }
 0x40a   : > { %s598_s13 = scalar_lea.sflag [#allocation3], %s597_s11 }
 0x40b   : > { %p697_p1 = pnand %p702_p0, %p909_p6 }
 0x40d   : > { %809 = dma.done.wait (!%p697_p1), %s598_s13, 256  }
 0x40e   : > { %811 = vsyncadd (!%p697_p1), %s598_s13, 4294967040  ;;  %p17_p2 = scmp.ge.s32.totalorder %s892_s27, 4   ;;  %s1033_s21 = smov %s818_s22 }
 0x40f   : > { %s1034_s22 = smov %s822_s23  ;;  %s1035_s23 = smov %s903_s30 }
 0x410   : > { %s1036_s24 = smov %s892_s27  ;;  %19 = sbr.rel (!%p17_p2) target bundleno = 4 (0x4), region = 84 }
 0x417   :  { %603 = vsyncpa [#allocation3], 1 }
 0x418   :  { %605 = vsyncpa [#allocation3 + $0x1], 1 }
 0x419   :  { %606 = vsyncpa [#allocation4], 1 }
 0x41a   :  { %608 = vsyncpa [#allocation4 + $0x1], 1 }

</bundles_post_ra>
